<compile_context>
chip_gen: v7x
topology: tpu7x:2x2x1
jax: 0.10.0
libtpu: 0.0.40
codegen_flags: <defaults>
</compile_context>

<pallas_src>
import functools

import jax
import jax.numpy as jnp
from jax import lax
from jax.experimental import pallas as pl
from jax.experimental.pallas import tpu as pltpu


def _conv2d_kernel(x_ref, w_ref, o_ref, *, KH, KW, stride, dilation, Wp, L, Cin):
    """One grid step = one batch element.

    x_ref: (1, Cin, Hp*Wp)    flattened zero-padded input image (VMEM)
    w_ref: (Cout, KH*KW*Cin)  weight in matmul layout, cols ordered (kh, kw, cin)
    o_ref: (1, Cout, L)       pitched output, lane index i = ho*Wp + wo
    """
    x = x_ref[0]                                        # (Cin, Hp*Wp)

    # Assemble the fused-K operand from shifted windows: tap (kh, kw) is the
    # flat input shifted by a constant lane offset (static slices only).
    taps = []
    for kh in range(KH):
        for kw in range(KW):
            off = dilation * (kh * Wp + kw)
            if stride == 1:
                taps.append(x[:, off:off + L])          # (Cin, L)
            else:
                taps.append(
                    lax.slice(x, (0, off),
                              (Cin, off + stride * (L - 1) + 1),
                              strides=(1, stride)))
    rhs = jnp.concatenate(taps, axis=0)                 # (KH*KW*Cin, L)

    # Single MXU matmul over the fused contraction K = KH*KW*Cin.
    # TODO(synk): cast both operands to bf16 on v6e/v7x once MXU-bound;
    # kept f32 here to match the PyTorch module's numerics.
    acc = jnp.dot(w_ref[...], rhs,
                  preferred_element_type=jnp.float32)   # (Cout, L)

    o_ref[0] = acc.astype(o_ref.dtype)                  # lane-dense store


def conv2d_pallas(x_nchw, w_oihw, *, stride=1, padding=0, dilation=1, bias=None):
    """Mirrors Conv2d.forward: nn.Conv2d(Cin, Cout, K, stride, padding, bias).

    Note: like the PyTorch module (which never passes `dilation` to nn.Conv2d),
    the effective default is dilation=1; a dilation argument is still honored
    here because the shifted-window trick supports it for free.

    x_nchw: (N, Cin, H, W)      float32
    w_oihw: (Cout, Cin, KH, KW) float32
    returns (N, Cout, Ho, Wo)   float32 (NCHW, same as PyTorch)
    """
    N, Cin, H, W = x_nchw.shape
    Cout, Cin_w, KH, KW = w_oihw.shape
    assert Cin == Cin_w, "groups != 1 is not supported (module has no groups)"
    assert stride >= 1 and padding >= 0 and dilation >= 1

    Ho = (H + 2 * padding - dilation * (KH - 1) - 1) // stride + 1
    Wo = (W + 2 * padding - dilation * (KW - 1) - 1) // stride + 1
    Hp, Wp = H + 2 * padding, W + 2 * padding
    L = (Ho - 1) * Wp + Wo                 # pitched output length (fits input)
    K = KH * KW * Cin

    # Wrapper-side glue: zero pad + flatten spatial (metadata-only reshape),
    # and pre-reshape the weight into its final matmul layout.
    x_pad = jnp.pad(x_nchw, ((0, 0), (0, 0),
                             (padding, padding), (padding, padding)))
    x_flat = x_pad.reshape(N, Cin, Hp * Wp)
    w_mat = jnp.transpose(w_oihw, (0, 2, 3, 1)).reshape(Cout, K)  # (kh,kw,cin)

    kernel = functools.partial(
        _conv2d_kernel, KH=KH, KW=KW, stride=stride, dilation=dilation,
        Wp=Wp, L=L, Cin=Cin)

    out_pitched = pl.pallas_call(
        kernel,
        out_shape=jax.ShapeDtypeStruct((N, Cout, L), x_nchw.dtype),
        grid_spec=pltpu.PrefetchScalarGridSpec(
            num_scalar_prefetch=0,
            grid=(N,),
            in_specs=[
                pl.BlockSpec((1, Cin, Hp * Wp), lambda n: (n, 0, 0)),
                pl.BlockSpec((Cout, K), lambda n: (0, 0)),   # grid-invariant
            ],
            out_specs=pl.BlockSpec((1, Cout, L), lambda n: (n, 0, 0)),
        ),
        compiler_params=pltpu.CompilerParams(
            dimension_semantics=("parallel",)),   # shards batch over v7x's 2 TCs
    )(x_flat, w_mat)

    # De-pitch: lane i = ho*Wp + wo -> (Ho, Wo). Cheap pad+reshape+slice in XLA.
    out = jnp.pad(out_pitched, ((0, 0), (0, 0), (0, Ho * Wp - L)))
    out = out.reshape(N, Cout, Ho, Wp)[:, :, :, :Wo]        # (N, Cout, Ho, Wo)

    if bias is not None:                                    # module default: bias=False
        out = out + bias[None, :, None, None]
    return out


if __name__ == "__main__":
    # Module config (synthetic, deterministic):
    # Conv2d(4, 8, kernel_size=3, stride=1, padding=1, bias=False)
    in_channels, out_channels, kernel_size, stride, padding = 4, 8, 3, 1, 1

    key = jax.random.PRNGKey(0)
    kx, kw = jax.random.split(key)
    x = jax.random.normal(kx, (2, in_channels, 16, 16), dtype=jnp.float32)
    w = jax.random.normal(
        kw, (out_channels, in_channels, kernel_size, kernel_size),
        dtype=jnp.float32) * 0.1

    y = conv2d_pallas(x, w, stride=stride, padding=padding)
    y = jax.block_until_ready(y)

    # Cross-check against XLA's conv (HIGHEST precision reference). Tolerance
    # is kept loose to be robust across MXU precision modes; f32 MXU error is
    # normally ~1e-6.
    y_ref = lax.conv_general_dilated(
        x, w, window_strides=(stride, stride),
        padding=((padding, padding), (padding, padding)),
        dimension_numbers=("NCHW", "OIHW", "NCHW"),
        precision=lax.Precision.HIGHEST)
    assert y.shape == (2, out_channels, 16, 16)
    assert jnp.allclose(y, y_ref, atol=1e-2, rtol=1e-2), \
        float(jnp.max(jnp.abs(y - y_ref)))

    print("KERNEL_OK")
</pallas_src>

<mosaic_0001>
module attributes {stable_mosaic.version = 11 : i64} {
  func.func @_conv2d_kernel(%arg0: i32, %arg1: memref<1x4x324xf32, #tpu.memory_space<vmem>>, %arg2: memref<8x36xf32, #tpu.memory_space<vmem>>, %arg3: memref<1x8x286xf32, #tpu.memory_space<vmem>>) attributes {dimension_semantics = [#tpu.dimension_semantics<parallel>], iteration_bounds = array<i64: 2>, scalar_prefetch = 0 : i64, scratch_operands = 0 : i64, tpu.core_type = #tpu.core_type<tc>, window_params = [{transform_indices = @transform_0, window_bounds = array<i64: 1, 4, 324>}, {pipeline_mode = #tpu.pipeline_mode<synchronous>, transform_indices = @transform_1, window_bounds = array<i64: 8, 36>}, {transform_indices = @transform_2, window_bounds = array<i64: 1, 8, 286>}]} {
    %c0 = arith.constant 0 : index
    %c0_0 = arith.constant 0 : index
    %c0_1 = arith.constant 0 : index
    %0 = vector.load %arg1[%c0, %c0_0, %c0_1] : memref<1x4x324xf32, #tpu.memory_space<vmem>>, vector<1x4x324xf32>
    %1 = vector.shape_cast %0 : vector<1x4x324xf32> to vector<4x324xf32>
    %2 = vector.extract_strided_slice %1 {offsets = [0, 0], sizes = [4, 286], strides = [1, 1]} : vector<4x324xf32> to vector<4x286xf32>
    %3 = vector.extract_strided_slice %1 {offsets = [0, 1], sizes = [4, 286], strides = [1, 1]} : vector<4x324xf32> to vector<4x286xf32>
    %4 = vector.extract_strided_slice %1 {offsets = [0, 2], sizes = [4, 286], strides = [1, 1]} : vector<4x324xf32> to vector<4x286xf32>
    %5 = vector.extract_strided_slice %1 {offsets = [0, 18], sizes = [4, 286], strides = [1, 1]} : vector<4x324xf32> to vector<4x286xf32>
    %6 = vector.extract_strided_slice %1 {offsets = [0, 19], sizes = [4, 286], strides = [1, 1]} : vector<4x324xf32> to vector<4x286xf32>
    %7 = vector.extract_strided_slice %1 {offsets = [0, 20], sizes = [4, 286], strides = [1, 1]} : vector<4x324xf32> to vector<4x286xf32>
    %8 = vector.extract_strided_slice %1 {offsets = [0, 36], sizes = [4, 286], strides = [1, 1]} : vector<4x324xf32> to vector<4x286xf32>
    %9 = vector.extract_strided_slice %1 {offsets = [0, 37], sizes = [4, 286], strides = [1, 1]} : vector<4x324xf32> to vector<4x286xf32>
    %10 = vector.extract_strided_slice %1 {offsets = [0, 38], sizes = [4, 286], strides = [1, 1]} : vector<4x324xf32> to vector<4x286xf32>
    %11 = tpu.concatenate %2, %3, %4, %5, %6, %7, %8, %9, %10 in 0 : vector<4x286xf32>, vector<4x286xf32>, vector<4x286xf32>, vector<4x286xf32>, vector<4x286xf32>, vector<4x286xf32>, vector<4x286xf32>, vector<4x286xf32>, vector<4x286xf32> -> vector<36x286xf32>
    %c0_2 = arith.constant 0 : index
    %c0_3 = arith.constant 0 : index
    %12 = vector.load %arg2[%c0_2, %c0_3] : memref<8x36xf32, #tpu.memory_space<vmem>>, vector<8x36xf32>
    %cst = arith.constant dense<0.000000e+00> : vector<8x286xf32>
    %13 = tpu.matmul %12, %11, %cst {dimension_numbers = #tpu.dot_dimension_numbers<[1], [0], [0], [1], [0, 0, 1, 1], [], []>} : vector<8x36xf32>, vector<36x286xf32>, vector<8x286xf32> -> vector<8x286xf32>
    %c0_4 = arith.constant 0 : index
    %c0_5 = arith.constant 0 : index
    %c0_6 = arith.constant 0 : index
    %14 = vector.load %arg3[%c0_4, %c0_5, %c0_6] : memref<1x8x286xf32, #tpu.memory_space<vmem>>, vector<1x8x286xf32>
    %15 = vector.shape_cast %14 : vector<1x8x286xf32> to vector<8x286xf32>
    %16 = vector.shape_cast %13 : vector<8x286xf32> to vector<1x8x286xf32>
    tpu.vector_store %arg3[%c0_4, %c0_5, %c0_6], %16 {strides = array<i32>} : memref<1x8x286xf32, #tpu.memory_space<vmem>>, vector<1x8x286xf32>,
    return
  }
  func.func @transform_0(%arg0: i32) -> (i32, i32, i32) {
    %c0_i32 = arith.constant 0 : i32
    %c0_i32_0 = arith.constant 0 : i32
    %c0_i32_1 = arith.constant 0 : i32
    return %arg0, %c0_i32, %c0_i32_0 : i32, i32, i32
  }
  func.func @transform_1(%arg0: i32) -> (i32, i32) {
    %c0_i32 = arith.constant 0 : i32
    %c0_i32_0 = arith.constant 0 : i32
    %c0_i32_1 = arith.constant 0 : i32
    return %c0_i32, %c0_i32_0 : i32, i32
  }
  func.func @transform_2(%arg0: i32) -> (i32, i32, i32) {
    %c0_i32 = arith.constant 0 : i32
    %c0_i32_0 = arith.constant 0 : i32
    %c0_i32_1 = arith.constant 0 : i32
    return %arg0, %c0_i32, %c0_i32_0 : i32, i32, i32
  }
}

</mosaic_0001>

<bundles_post_ra>
// kernel: tpu_custom_call.1
= control target key start
LH: loop header
LB: loop body
LE: loop exit
PB: predicated region body
PF: predicated region fallthrough
CT: control target
= control target key end

     0   :  { %7 = vsyncpa [#allocation3], 0  ;;  %s1098_s0 = inlined_call_operand.hbm [shape: f32[2,4,324], index: 0, kind: input, shape index: {}]   ;;  %s1099_s1 = inlined_call_operand.hbm [shape: f32[8,36], index: 1, kind: input, shape index: {}]   ;;  %s1100_s2 = inlined_call_operand.hbm [shape: f32[2,8,286], index: 2, kind: output, shape index: {}]  }
   0x1   :  { %9 = vsyncpa [#allocation3 + $0x1], 0 }
   0x2   :  { %10 = vsyncpa [#allocation6], 0 }
   0x3   :  { %11 = vsyncpa [#allocation4], 0 }
   0x4   :  { %13 = vsyncpa [#allocation4 + $0x1], 0  ;;  %s856_s9 = smov 0   ;;  %s858_s10 = smov 0  }
   0x5   :  { %s860_s11 = smov 0   ;;  %s862_s12 = smov 0  }
   0x6 LB: > { %s877_s13 = sadd.s32 4294967295, %s825_s12   ;;  %s538_s14 = sadd.s32 4294967294, %s825_s12   ;;  %s825_s12 = sphi %s862_s12, %s1124_s12   ;;  %s821_s11 = sphi %s860_s11, %s1123_s11   ;;  %s817_s10 = sphi %s858_s10, %s1122_s10   ;;  %s813_s9 = sphi %s856_s9, %s1121_s9  }
   0x7   : > { %p39_p0 = scmp.ne.s32.totalorder %s817_s10, %s813_s9  ;;  %p1101_p1 = scmp.eq.s32.totalorder %s877_s13, 0 }
   0x8   : > { %p90_p3 = scmp.eq.s32.totalorder %s538_s14, 1  ;;  %p539_p5 = scmp.ge.s32.totalorder %s825_s12, 1 }
   0x9   : > { %p886_p4 = por %p1101_p1, %p39_p0  ;;  %p97_p7 = scmp.lt.s32.totalorder %s825_s12, 3 }
   0xa   : > { %p891_p6 = por %p90_p3, %p39_p0  ;;  %s827_s18 = smov [#allocation5]  }
   0xb   : > { %s1104_s15 = scalar_select %p886_p4, 1, 0 }
   0xc   : > { %s1105_s16 = scalar_select %p891_p6, 1, 0 }
   0xd   : > { %p896_p8 = pnand %p539_p5, %p97_p7  ;;  %s110_s19 = sshll.u32 %s827_s18, 4  ;;  %s111_s19 = int_to_ptr.vmem [resolvable:$true] %s110_s19 }
   0xe   : > { %s904_s20 = sadd.s32 1, %s825_s12   ;;  %s26_s24 = sadd.s32 1, %s821_s11 }
   0xf   : > { %s1106_s17 = scalar_select %p896_p8, 1, 0 }
  0x10   : > { %p599_p10 = pneg %p896_p8  ;;  %s23_s22 = ssub.s32 %s825_s12, %s904_s20 }
  0x11   : > { %p914_p12 = scmp.eq.s32.totalorder %s23_s22, 0  ;;  %s697_s27 = scalar_lea.hbm %s1099_s1, 128 }
  0x12   : > { %p908_p11 = pnand %p599_p10, %p1101_p1  ;;  %p698_p0 = scmp.ne.s32.totalorder %s1099_s1, %s697_s27 }
  0x13   : > { %s1108_s23 = scalar_select %p914_p12, 1, 0 }
  0x14   : > { %p699_p3 = pneg %p908_p11  ;;  %p704_p10 = scmp.lt.u32.totalorder %s697_s27, %s1099_s1 }
  0x16   : > { %p700_p5 = pnand %p699_p3, %p698_p0 }
  0x18   : > { %p701_p7 = pneg %p700_p5 }
  0x1a   : > { %p706_p9 = pnand %p704_p10, %p701_p7 }
  0x1c   : > { %709 = shalt.err (!%p706_p9)
}
  0x1d   : > { %s710_s4 = scalar_lea.vmem %s111_s19, 128  ;;  %p718_p6 = scmp.lt.s32.totalorder %s111_s19, %s111_s19 }
  0x1e   : > { %p711_p1 = scmp.ne.s32.totalorder %s111_s19, %s710_s4  ;;  %p719_p4 = scmp.lt.s32.totalorder %s710_s4, %s710_s4 }
  0x20   : > { %p713_p2 = pnand %p711_p1, %p699_p3  ;;  %p720_p8 = por %p719_p4, %p718_p6 }
  0x22   : > { %p714_p13 = pneg %p713_p2 }
  0x24   : > { %p721_p12 = pnand %p720_p8, %p714_p13 }
  0x26   : > { %724 = shalt.err (!%p721_p12)
}
  0x27   : > { %602 = dma.hbm_to_vmem [thread:$0]  (!%p908_p11), %s1099_s1, 128, %s111_s19, [#allocation6]  }
  0x28   : > { %p1109_p1 = scmp.ne.s32.totalorder %s1108_s23, 0  ;;  %p34_p2 = scmp.eq.s32.totalorder %s825_s12, 0 }
  0x29   : > { %p1110_p4 = scmp.ne.s32.totalorder %s821_s11, %s817_s10  ;;  %p1111_p6 = scmp.eq.s32.totalorder %s877_s13, 1 }
  0x2a   : > { %s940_s7 = scalar_select %p1109_p1, %s821_s11, %s26_s24  }
  0x2b   : > { %p948_p8 = por %p1111_p6, %p1110_p4  ;;  %p612_p9 = scmp.lt.s32.totalorder %s825_s12, 2 }
  0x2c   : > { %s121_s14 = sand.u32 1, %s821_s11   ;;  %p1113_p12 = pmov %p1110_p4 }
  0x2d   : > { %s586_s18 = smul.u32 12, %s121_s14  ;;  %s122_s27 = scalar_lea.sflag [#allocation3], %s121_s14 }
  0x2e   : > { %p35_p13 = por %p34_p2, %p1113_p12  ;;  %s587_s21 = smul.u32 192, %s825_s12 }
  0x2f   : > { %s125_s25 = scalar_lea.vmem [#allocation2], %s586_s18  ;;  %s730_s3 = scalar_lea.hbm %s1098_s0, 384 }
  0x30   : > { %p958_p0 = pnand %p612_p9, %p35_p13  ;;  %s965_s24 = scalar_lea.hbm %s1098_s0, %s587_s21 }
  0x31   : > { %s133_s26 = sshll.u32 %s125_s25, 4  ;;  %s725_s28 = scalar_lea.hbm %s965_s24, 192  ;;  %s967_s26 = int_to_ptr.vmem [resolvable:$true] %s133_s26 }
  0x32   : > { %p726_p11 = scmp.ne.s32.totalorder %s965_s24, %s725_s28  ;;  %p727_p3 = pneg %p958_p0 }
  0x33   : > { %p731_p10 = scmp.lt.u32.totalorder %s965_s24, %s1098_s0  ;;  %p732_p1 = scmp.lt.u32.totalorder %s730_s3, %s725_s28 }
  0x34   : > { %p728_p5 = pnand %p727_p3, %p726_p11  ;;  %p734_p4 = scmp.lt.u32.totalorder %s725_s28, %s965_s24 }
  0x35   : > { %p733_p2 = por %p732_p1, %p731_p10 }
  0x36   : > { %p729_p7 = pneg %p728_p5 }
  0x37   : > { %p735_p6 = por %p734_p4, %p733_p2 }
  0x39   : > { %p736_p9 = pnand %p735_p6, %p729_p7 }
  0x3b   : > { %739 = shalt.err (!%p736_p9)
}
  0x3c   : > { %s740_s6 = scalar_lea.vmem %s967_s26, 192  ;;  %s828_s14 = smov [#allocation2]  }
  0x3d   : > { %p741_p12 = scmp.ne.s32.totalorder %s967_s26, %s740_s6  ;;  %s745_s18 = sshll.u32 %s828_s14, 4  ;;  %s746_s18 = int_to_ptr.vmem [resolvable:$false] %s745_s18 }
  0x3e   : > { %s747_s21 = scalar_lea.vmem %s746_s18, 384  ;;  %p748_p5 = scmp.lt.s32.totalorder %s967_s26, %s746_s18 }
  0x3f   : > { %p743_p13 = pnand %p741_p12, %p727_p3  ;;  %p749_p10 = scmp.lt.s32.totalorder %s747_s21, %s740_s6 }
  0x41   : > { %p744_p11 = pneg %p743_p13  ;;  %p750_p1 = por %p749_p10, %p748_p5 }
  0x43   : > { %p751_p2 = pnand %p750_p1, %p744_p11 }
  0x45   : > { %754 = shalt.err (!%p751_p2)
}
  0x46   : > { %606 = dma.hbm_to_vmem [thread:$0]  (!%p958_p0), %s965_s24, 192, %s967_s26, %s122_s27  }
  0x47   : > { %p1115_p7 = scmp.ne.s32.totalorder %s1106_s17, 0 }
  0x48   : > { %s997_s19 = sand.u32 (!%p1115_p7), 1, %s817_s10   ;;  %p1116_p3 = scmp.ne.s32.totalorder (!%p1115_p7), %s1104_s15, 0 }
  0x49   : > { %142 = sbr.rel (%p1115_p7) target bundleno = 464 (0x1d0), region = 28  ;;  %s145_s25 = scalar_lea.sflag (!%p1115_p7), [#allocation3], %s997_s19 }
  0x4a   : > { %s588_s23 = smul.u32 (!%p1115_p7), 12, %s997_s19 }
  0x4c   : > { %s148_s28 = scalar_lea.vmem (!%p1115_p7), [#allocation2], %s588_s23 }
  0x50   : > { %800 = dma.done.wait (%p1116_p3), %s145_s25, 192  }
  0x51   : > { %802 = vsyncadd (%p1116_p3), %s145_s25, 4294967104  ;;  %p1117_p4 = scmp.eq.s32.totalorder %s877_s13, 0 }
  0x53   : > { %804 = dma.done.wait (%p1117_p4), [#allocation6], 128   ;;  %p1118_p0 = pmov %p1117_p4 }
  0x54   : > { %v1009_v0 = vld [vmem:[%s148_s28] sm:$0xff]  ;;  %v174_v1 = vld [vmem:[%s148_s28 + $0x8] sm:$0xf]  ;;  %v829_v2 = vmov 0.0|0.0   ;;  %s830_s17 = smov 126   ;;  %s831_s15 = smov 110  }
  0x55   : > { %806 = vsyncadd (%p1118_p0), [#allocation6], 4294967168  ;;  %580 = vmatprep.subr.bf16.mxu1 %v829_v2  ;;  %193 = vrot.lane.b32.xlu0 %v1009_v0, %s830_s17  ;;  %v180_v3 = vcombine.low %v174_v1, %v174_v1  ;;  %v177_v4 = vcombine.high %v1009_v0, %v1009_v0  ;;  %s832_s22 = smov 127   ;;  %v179_v6 = vcombine.low %v1009_v0, %v1009_v0  ;;  %s833_s24 = smov 109   ;;  %v837_v8 = vmov 0.0  }
  0x56   : > { %s834_s26 = smov 108   ;;  %s835_s27 = smov 92   ;;  %362 = vmatprep.mubr.f32.mxu0 %v837_v8  ;;  %vm838_vm0 = vmmov 0   ;;  %vm187_vm1 = vcmask 1039360   ;;  %vm274_vm2 = vcmask 1043456   ;;  %vm211_vm3 = vcmask 900096  }
  0x57   : > { %v669_v5 = vpack.i.bf16 %v180_v3, %v1009_v0  ;;  %v664_v7 = vpack.i.bf16 %v174_v1, %v177_v4  ;;  %s836_s29 = smov 91   ;;  %569 = vmatprep.mubr.msk.f32.mxu1 %vm838_vm0, %v837_v8  ;;  %s839_s30 = smov 90   ;;  %vm199_vm4 = vcmask 1031168   ;;  %vm223_vm5 = vcmask 891904  }
  0x58   : > { %vm235_vm6 = vcmask 883712   ;;  %vm247_vm7 = vcmask 752640   ;;  %vm259_vm8 = vcmask 744448   ;;  %vm271_vm9 = vcmask 736256   ;;  %s589_s3 = smul.u32 24, %s997_s19  ;;  %s444_s23 = scalar_lea.sflag [#allocation4], %s997_s19 }
  0x59   : > { %670 = vrot.lane.b32.xlu1 %v669_v5, %s831_s15  ;;  %660 = vrot.lane.b32.xlu0 %v669_v5, %s832_s22  ;;  %vm288_vm10 = vcmask 293888   ;;  %vm441_vm11 = vcmask 244736   ;;  %s590_s6 = smul.u32 384, %s877_s13  ;;  %s840_s13 = smov [#allocation7]  }
  0x5a   : > { %s172_s4 = scalar_lea.vmem [#allocation7], %s589_s3  ;;  %s759_s28 = sshll.u32 %s840_s13, 4  ;;  %s760_s28 = int_to_ptr.vmem [resolvable:$false] %s759_s28 }
  0x5b   : > { %s458_s5 = sshll.u32 %s172_s4, 4  ;;  %s1056_s21 = scalar_lea.hbm %s1100_s2, %s590_s6  ;;  %s1051_s5 = int_to_ptr.vmem [resolvable:$true] %s458_s5 }
  0x5c   : > { %s755_s25 = scalar_lea.vmem %s1051_s5, 384  ;;  %p762_p13 = scmp.lt.s32.totalorder %s1051_s5, %s760_s28 }
  0x5d   : > { %181 = vrot.lane.b32.xlu1 %v179_v6, %s832_s22  ;;  %665 = vrot.lane.b32.xlu0 %v664_v7, %s830_s17  ;;  %p756_p6 = scmp.ne.s32.totalorder %s1051_s5, %s755_s25  ;;  %s761_s17 = scalar_lea.vmem %s760_s28, 768 }
  0x5e   : > { %p763_p11 = scmp.lt.s32.totalorder %s761_s17, %s755_s25 }
  0x5f   : > { %p757_p9 = pnand %p756_p6, %p948_p8 }
  0x60   : > { %p764_p5 = por %p763_p11, %p762_p13 }
  0x61   : > { %205 = vrot.lane.b32.xlu1 %v179_v6, %s831_s15  ;;  %675 = vrot.lane.b32.xlu0 %v664_v7, %s833_s24  ;;  %p758_p12 = pneg %p757_p9 }
  0x63   : > { %p765_p10 = pnand %p764_p5, %p758_p12 }
  0x65   : > { %680 = vrot.lane.b32.xlu1 %v669_v5, %s834_s26  ;;  %685 = vrot.lane.b32.xlu0 %v664_v7, %s835_s27 }
  0x69   : > { %690 = vrot.lane.b32.xlu1 %v669_v5, %s836_s29  ;;  %217 = vrot.lane.b32.xlu0 %v1009_v0, %s833_s24 }
  0x6d   : > { %229 = vrot.lane.b32.xlu1 %v179_v6, %s834_s26  ;;  %241 = vrot.lane.b32.xlu0 %v1009_v0, %s835_s27 }
  0x71   : > { %253 = vrot.lane.b32.xlu1 %v179_v6, %s836_s29  ;;  %267 = vrot.lane.b32.xlu0 %v177_v4, %s839_s30  ;;  %v287_v6 = vld [vmem:[#allocation5] sm:$0xff] }
  0x75   : > { %269 = vrot.lane.b32.xlu1 %v174_v1, %s839_s30  ;;  %265 = vrot.lane.b32.xlu0 %v1009_v0, %s839_s30 }
  0xc7   : > { %v194_v9 = vpop.permute.xlu0 %193 }
  0xcb   : > { %v671_v10 = vpop.permute.xlu1 %670  ;;  %v661_v11 = vpop.permute.xlu0 %660 }
  0xcc   : > { %v663_v12 = vunpack.i.h.bf16 %v661_v11  ;;  %v662_v13 = vunpack.i.l.bf16 %v661_v11  ;;  %v673_v14 = vunpack.i.h.bf16 %v671_v10  ;;  %v672_v15 = vunpack.i.l.bf16 %v671_v10 }
  0xce   : > { %v189_v16 = vsel %vm187_vm1, %v662_v13, %v663_v12  ;;  %v277_v21 = vsel %vm274_vm2, %v174_v1, %v663_v12  ;;  %v213_v26 = vsel %vm211_vm3, %v672_v15, %v673_v14 }
  0xcf   : > { %v182_v17 = vpop.permute.xlu1 %181  ;;  %v666_v18 = vpop.permute.xlu0 %665  ;;  %v276_v22 = vsel %vm274_vm2, %v177_v4, %v189_v16 }
  0xd0   : > { %v668_v19 = vunpack.i.h.bf16 %v666_v18  ;;  %v667_v20 = vunpack.i.l.bf16 %v666_v18  ;;  %v188_v23 = vsel %vm187_vm1, %v182_v17, %v662_v13 }
  0xd1   : > { %v275_v34 = vsel %vm274_vm2, %v1009_v0, %v188_v23 }
  0xd2   : > { %v280_v24 = vsel %vm274_vm2, %v668_v19, %v673_v14  ;;  %v201_v25 = vsel %vm199_vm4, %v667_v20, %v668_v19  ;;  %v200_v33 = vsel %vm199_vm4, %v194_v9, %v667_v20 }
  0xd3   : > { %v206_v27 = vpop.permute.xlu1 %205  ;;  %v676_v28 = vpop.permute.xlu0 %675  ;;  %v581_v29 = vpack.c.bf16 %v280_v24, %v277_v21  ;;  %v279_v30 = vsel %vm274_vm2, %v201_v25, %v213_v26 }
  0xd4   : > { %v212_v31 = vsel %vm211_vm3, %v206_v27, %v672_v15  ;;  %v572_v32 = vpack.c.bf16 %v279_v30, %v276_v22  ;;  %v678_v37 = vunpack.i.h.bf16 %v676_v28  ;;  %v677_v38 = vunpack.i.l.bf16 %v676_v28 }
  0xd5   : > { %582 = vmatpush3.bf16.msra.mxu1 %v581_v29  ;;  %v278_v35 = vsel %vm274_vm2, %v200_v33, %v212_v31 }
  0xd6   : > { %573 = vmatprep.subr.bf16.mxu0 %v572_v32  ;;  %v574_v36 = vpack.c.bf16 %v278_v35, %v275_v34  ;;  %583 = vmatprep.subr.bf16.mxu1 %v829_v2  ;;  %v225_v47 = vsel %vm223_vm5, %v677_v38, %v678_v37 }
  0xd7   : > { %v681_v39 = vpop.permute.xlu1 %680  ;;  %v686_v40 = vpop.permute.xlu0 %685 }
  0xd8   : > { %v683_v41 = vunpack.i.h.bf16 %v681_v39  ;;  %v682_v42 = vunpack.i.l.bf16 %v681_v39  ;;  %v688_v43 = vunpack.i.h.bf16 %v686_v40  ;;  %v687_v44 = vunpack.i.l.bf16 %v686_v40  ;;  %575 = vmatpush1.bf16.msra.mxu0 %v574_v36 }
  0xda   : > { %v237_v50 = vsel %vm235_vm6, %v682_v42, %v683_v41  ;;  %v249_v51 = vsel %vm247_vm7, %v687_v44, %v688_v43  ;;  %v283_v53 = vsel %vm274_vm2, %v678_v37, %v683_v41 }
  0xdb   : > { %v691_v45 = vpop.permute.xlu1 %690  ;;  %v218_v46 = vpop.permute.xlu0 %217  ;;  %v282_v58 = vsel %vm274_vm2, %v225_v47, %v237_v50 }
  0xdc   : > { %v693_v48 = vunpack.i.h.bf16 %v691_v45  ;;  %v692_v49 = vunpack.i.l.bf16 %v691_v45  ;;  %v224_v0 = vsel %vm223_vm5, %v218_v46, %v677_v38 }
  0xde   : > { %v261_v52 = vsel %vm259_vm8, %v692_v49, %v693_v48  ;;  %v286_v54 = vsel %vm274_vm2, %v688_v43, %v693_v48 }
  0xdf   : > { %v230_v55 = vpop.permute.xlu1 %229  ;;  %v242_v56 = vpop.permute.xlu0 %241  ;;  %v584_v57 = vpack.c.bf16 %v286_v54, %v283_v53  ;;  %v285_v59 = vsel %vm274_vm2, %v249_v51, %v261_v52 }
  0xe0   : > { %v576_v60 = vpack.c.bf16 %v285_v59, %v282_v58  ;;  %v236_v61 = vsel %vm235_vm6, %v230_v55, %v682_v42  ;;  %v248_v1 = vsel %vm247_vm7, %v242_v56, %v687_v44 }
  0xe1   : > { %585 = vmatpush3.bf16.msra.mxu1 %v584_v57  ;;  %v281_v3 = vsel %vm274_vm2, %v224_v0, %v236_v61 }
  0xe2   : > { %577 = vmatprep.subr.bf16.mxu0 %v576_v60  ;;  %567 = vmatprep.subr.mxu1 %v837_v8 }
  0xe3   : > { %v254_v62 = vpop.permute.xlu1 %253  ;;  %v268_v63 = vpop.permute.xlu0 %267 }
  0xe4   : > { %v260_v2 = vsel %vm259_vm8, %v254_v62, %v692_v49 }
  0xe5   : > { %v284_v4 = vsel %vm274_vm2, %v248_v1, %v260_v2 }
  0xe6   : > { %v578_v5 = vpack.c.bf16 %v284_v4, %v281_v3 }
  0xe7   : > { %v270_v7 = vpop.permute.xlu1 %269  ;;  %v266_v9 = vpop.permute.xlu0 %265 }
  0xe8   : > { %v273_v8 = vsel %vm271_vm9, %v268_v63, %v270_v7  ;;  %579 = vmatpush1.bf16.msra.mxu0 %v578_v5  ;;  %568 = vmatpush3.msk.msra.mxu1 %vm274_vm2, %v270_v7  ;;  %v272_v10 = vsel %vm271_vm9, %v266_v9, %v268_v63 }
  0xe9   : > { %545 = vmatprep.subr.msk.mxu0 %vm274_vm2, %v273_v8  ;;  %570 = vmatmul.mubr.msk.f32.vlgmr.msra.gmra.mrb[0].mxu1 %vm288_vm10, %v287_v6 }
  0xec   : > { %546 = vmatpush1.msk.msra.mxu0 %vm274_vm2, %v272_v10 }
  0xed   : > { %547 = vmatmul.mubr.msk.f32.vlgmr.msra.gmra.mrb[0].mxu0 %vm288_vm10, %v287_v6 }
 0x1bc   : > { %v435_v11 = vpop.f32.mrb[0].mxu1 }
 0x1bd   : > { %442 = vst.msk [vmem:[%s172_s4 + $0x10] sm:$0xff] %vm441_vm11, %v435_v11  ;;  %v571_v12 = vpop.f32.mrb[1].mxu1 }
 0x1c0   : > { %v364_v13 = vpop.f32.mrb[0].mxu0 }
 0x1c1   : > { %439 = vst [vmem:[%s172_s4] sm:$0xff] %v364_v13  ;;  %v366_v14 = vpop.f32.mrb[1].mxu0 }
 0x1c2   : > { %440 = vst [vmem:[%s172_s4 + $0x8] sm:$0xff] %v366_v14 }
 0x1c3   : > { %768 = shalt.err (!%p765_p10)
}
 0x1c4   : > { %s769_s19 = scalar_lea.hbm %s1056_s21, 384  ;;  %s773_s24 = scalar_lea.hbm %s1100_s2, 768 }
 0x1c5   : > { %p770_p1 = scmp.ne.s32.totalorder %s1056_s21, %s769_s19  ;;  %p774_p3 = scmp.lt.u32.totalorder %s1056_s21, %s1100_s2 }
 0x1c6   : > { %p775_p4 = scmp.lt.u32.totalorder %s773_s24, %s769_s19  ;;  %p777_p6 = scmp.lt.u32.totalorder %s769_s19, %s1056_s21 }
 0x1c7   : > { %p771_p2 = pnand %p770_p1, %p948_p8 }
 0x1c8   : > { %p776_p0 = por %p775_p4, %p774_p3 }
 0x1c9   : > { %p772_p7 = pneg %p771_p2 }
 0x1ca   : > { %p778_p9 = por %p777_p6, %p776_p0 }
 0x1cc   : > { %p779_p12 = pnand %p778_p9, %p772_p7 }
 0x1ce   : > { %782 = shalt.err (!%p779_p12)
}
 0x1cf   : > { %597 = dma.vmem_to_hbm [thread:$0]  (%p948_p8), %s1051_s5, 384, %s1056_s21, %s444_s23  }
 0x1d0 PF: > { %s470_s29 = sand.u32 1, %s813_s9   ;;  %p1119_p13 = scmp.ne.s32.totalorder %s1105_s16, 0 }
 0x1d1   : > { %p1120_p11 = scmp.ge.s32.totalorder %s825_s12, 2  ;;  %s471_s30 = scalar_lea.sflag [#allocation4], %s470_s29 }
 0x1d3   : > { %p608_p5 = pnand %p1120_p11, %p1119_p13 }
 0x1d5   : > { %808 = dma.done.wait (!%p608_p5), %s471_s30, 384  }
 0x1d6   : > { %810 = vsyncadd (!%p608_p5), %s471_s30, 4294966912  ;;  %p16_p10 = scmp.ge.s32.totalorder %s904_s20, 4   ;;  %s1121_s9 = smov %s817_s10 }
 0x1d7   : > { %s1122_s10 = smov %s821_s11  ;;  %s1123_s11 = smov %s940_s7 }
 0x1d8   : > { %s1124_s12 = smov %s904_s20  ;;  %18 = sbr.rel (!%p16_p10) target bundleno = 6 (0x6), region = 77 }
 0x1df   :  { %476 = vsyncpa [#allocation3], 1 }
 0x1e0   :  { %478 = vsyncpa [#allocation3 + $0x1], 1 }
 0x1e1   :  { %479 = vsyncpa [#allocation6], 1 }
 0x1e2   :  { %480 = vsyncpa [#allocation4], 1 }
 0x1e3   :  { %482 = vsyncpa [#allocation4 + $0x1], 1 }

</bundles_post_ra>
